<compile_context>
chip_gen: v6e
topology: v6e:2x2x1
jax: 0.10.0
libtpu: 0.0.40
codegen_flags: <defaults>
</compile_context>

<pallas_src>
import numpy as np
import jax
import jax.numpy as jnp
from jax import lax
from jax.experimental import pallas as pl
from jax.experimental.pallas import tpu as pltpu

EPS = 1e-8           # PyTorch CosineSimilarity default eps
TM_DEFAULT = 256     # batch tile for production-size batches


def _round_up(x, m):
    return ((x + m - 1) // m) * m


def _make_kernel(n_true, tm, matmul_dtype):
    def kernel(e1_ref, e2_ref, wt_ref, b_ref, out_ref):
        # e1_ref : (TM, D1)    embs1 tile (f32)
        # e2_ref : (TM, D2)    embs2 tile (f32), to be projected
        # wt_ref : (D2, D1)    weight^T, pre-cast to matmul_dtype, VMEM-resident
        # b_ref  : (1, D1)     bias (f32), VMEM-resident
        # out_ref: (1, 8, 128) per-tile partial sum of (1 - cos), lane-dense
        i = pl.program_id(0)

        e1 = e1_ref[...]                                   # (TM, D1) f32
        b = b_ref[...]                                     # (1, D1)  f32

        # fc(embs2): MXU matmul, matmul_dtype inputs, f32 accumulation.
        p = jnp.dot(
            e2_ref[...].astype(matmul_dtype),
            wt_ref[...],
            preferred_element_type=jnp.float32,
        ) + b                                              # (TM, D1) f32

        # Cosine similarity along the feature axis (ATen eps form: clamp ss1*ss2
        # at eps^2; identical to clamping each norm at eps whenever norms > eps).
        dot = jnp.sum(e1 * p, axis=-1, keepdims=True)      # (TM, 1)
        ss1 = jnp.sum(e1 * e1, axis=-1, keepdims=True)     # (TM, 1)
        ss2 = jnp.sum(p * p, axis=-1, keepdims=True)       # (TM, 1)
        cos = dot * lax.rsqrt(jnp.maximum(ss1 * ss2, EPS * EPS))  # EUP rsqrt

        dists = 1.0 - cos                                  # (TM, 1)

        # Mask rows past the true batch size (last partial tile is padded).
        row = i * tm + lax.broadcasted_iota(jnp.int32, (tm, 1), 0)
        dists = jnp.where(row < n_true, dists, 0.0)

        tile_sum = jnp.sum(dists)
        out_ref[...] = jnp.full((1, 8, 128), tile_sum, dtype=jnp.float32)

    return kernel


def positive_pair_loss(embs1, embs2, weight, bias, music_ids=None,
                       tm=TM_DEFAULT, matmul_dtype=jnp.bfloat16):
    """embs1: (N, d1), embs2: (N, d2), weight: (min(d1,d2), max(d1,d2)) in PyTorch
    Linear (out, in) layout, bias: (min(d1,d2),). Returns scalar mean(1 - cos)."""
    if music_ids is not None:
        # TODO(synk): music_ids dedup needs data-dependent shapes (np.unique); it is
        # done host-side (mirrors the torch module's .cpu().numpy() path), not in-kernel.
        ids = np.asarray(music_ids)
        _, indices = np.unique(ids, return_index=True)
        idx = np.asarray(indices)
        embs1 = jnp.asarray(embs1)[idx]
        embs2 = jnp.asarray(embs2)[idx]

    d_e1 = embs1.shape[1]
    d_e2 = embs2.shape[1]
    # The module projects whichever embedding has the larger feature dim; cosine is
    # symmetric, so normalize to "embs2 is the projected (wider) one".
    if d_e1 > d_e2:
        embs1, embs2 = embs2, embs1
        d_e1, d_e2 = d_e2, d_e1
    # TODO(synk): dim1 == dim2 (no projection) branch not implemented; module default
    # is 256 != 768.
    assert d_e1 < d_e2, "equal-dim (no projection) path not supported"

    d_out, d_in = weight.shape          # PyTorch layout: (out=min, in=max)
    assert (d_out, d_in) == (d_e1, d_e2)

    n = embs1.shape[0]
    tm_eff = max(8, min(tm, _round_up(n, 8)))   # sublane-aligned, don't overshoot N
    num_tiles = pl.cdiv(n, tm_eff)

    # One-time wrapper-side prep: transpose weight to (in, out) and cast to the MXU
    # dtype so the resident weight needs no per-step transpose/cast and uses half
    # the VMEM; bias broadcast to 2D.
    wt = jnp.asarray(weight).T.astype(matmul_dtype)         # (d_in, d_out)
    b2d = jnp.asarray(bias).reshape(1, d_out).astype(jnp.float32)

    partials = pl.pallas_call(
        _make_kernel(n, tm_eff, matmul_dtype),
        out_shape=jax.ShapeDtypeStruct((num_tiles, 8, 128), jnp.float32),
        grid_spec=pltpu.PrefetchScalarGridSpec(
            num_scalar_prefetch=0,
            grid=(num_tiles,),
            in_specs=[
                pl.BlockSpec((tm_eff, d_out), lambda i: (i, 0)),   # embs1 tile
                pl.BlockSpec((tm_eff, d_in), lambda i: (i, 0)),    # embs2 tile
                pl.BlockSpec((d_in, d_out), lambda i: (0, 0)),     # weight^T (resident)
                pl.BlockSpec((1, d_out), lambda i: (0, 0)),        # bias (resident)
            ],
            out_specs=pl.BlockSpec((1, 8, 128), lambda i: (i, 0, 0)),
        ),
        compiler_params=pltpu.CompilerParams(
            dimension_semantics=("parallel",)),                    # megacore-shardable
    )(embs1, embs2, wt, b2d)

    # Tiny cross-tile reduction + true-N mean in plain JAX.
    return partials[:, 0, 0].sum() / n


def _reference(embs1, embs2, weight, bias):
    # Full-f32 reference matching the torch module.
    p = embs2 @ weight.T + bias
    dot = jnp.sum(embs1 * p, axis=-1)
    ss1 = jnp.sum(embs1 * embs1, axis=-1)
    ss2 = jnp.sum(p * p, axis=-1)
    cos = dot / jnp.sqrt(jnp.maximum(ss1 * ss2, EPS * EPS))
    return jnp.mean(1.0 - cos)


if __name__ == "__main__":
    key = jax.random.PRNGKey(0)
    k1, k2, kw, kb = jax.random.split(key, 4)

    DIM1, DIM2 = 256, 768      # module defaults (Linear is 768 -> 256)
    N = 50                     # small batch, non-multiple of the tile -> tail masking
    TM = 16                    # small tile so the grid has several steps

    embs1 = jax.random.normal(k1, (N, DIM1), dtype=jnp.float32)
    embs2 = jax.random.normal(k2, (N, DIM2), dtype=jnp.float32)

    # PyTorch-style Linear init: U(-1/sqrt(in), 1/sqrt(in)), weight (out, in).
    bound = 1.0 / np.sqrt(DIM2)
    weight = jax.random.uniform(kw, (DIM1, DIM2), minval=-bound, maxval=bound,
                                dtype=jnp.float32)
    bias = jax.random.uniform(kb, (DIM1,), minval=-bound, maxval=bound,
                              dtype=jnp.float32)

    # Plain path.
    loss = positive_pair_loss(embs1, embs2, weight, bias, music_ids=None, tm=TM)
    loss = jax.block_until_ready(loss)
    ref = _reference(embs1, embs2, weight, bias)
    assert jnp.allclose(loss, ref, rtol=1e-2, atol=1e-2), (loss, ref)

    # music_ids dedup path (host-side unique, then same kernel).
    music_ids = np.arange(N) % 37                      # duplicates -> 37 unique rows
    loss_d = positive_pair_loss(embs1, embs2, weight, bias, music_ids=music_ids, tm=TM)
    loss_d = jax.block_until_ready(loss_d)
    _, uidx = np.unique(music_ids, return_index=True)
    ref_d = _reference(embs1[np.asarray(uidx)], embs2[np.asarray(uidx)], weight, bias)
    assert jnp.allclose(loss_d, ref_d, rtol=1e-2, atol=1e-2), (loss_d, ref_d)

    print("KERNEL_OK")
</pallas_src>

<mosaic_0001>
module attributes {stable_mosaic.version = 11 : i64} {
  func.func @kernel(%arg0: i32, %arg1: memref<16x256xf32, #tpu.memory_space<vmem>>, %arg2: memref<16x768xf32, #tpu.memory_space<vmem>>, %arg3: memref<768x256xbf16, #tpu.memory_space<vmem>>, %arg4: memref<1x256xf32, #tpu.memory_space<vmem>>, %arg5: memref<1x8x128xf32, #tpu.memory_space<vmem>>) attributes {dimension_semantics = [#tpu.dimension_semantics<parallel>], iteration_bounds = array<i64: 4>, scalar_prefetch = 0 : i64, scratch_operands = 0 : i64, tpu.core_type = #tpu.core_type<tc>, window_params = [{transform_indices = @transform_0, window_bounds = array<i64: 16, 256>}, {transform_indices = @transform_1, window_bounds = array<i64: 16, 768>}, {pipeline_mode = #tpu.pipeline_mode<synchronous>, transform_indices = @transform_2, window_bounds = array<i64: 768, 256>}, {pipeline_mode = #tpu.pipeline_mode<synchronous>, transform_indices = @transform_3, window_bounds = array<i64: 1, 256>}, {transform_indices = @transform_4, window_bounds = array<i64: 1, 8, 128>}]} {
    %c0 = arith.constant 0 : index
    %c0_0 = arith.constant 0 : index
    %0 = vector.load %arg1[%c0, %c0_0] : memref<16x256xf32, #tpu.memory_space<vmem>>, vector<16x256xf32>
    %c0_1 = arith.constant 0 : index
    %c0_2 = arith.constant 0 : index
    %1 = vector.load %arg4[%c0_1, %c0_2] : memref<1x256xf32, #tpu.memory_space<vmem>>, vector<1x256xf32>
    %c0_3 = arith.constant 0 : index
    %c0_4 = arith.constant 0 : index
    %2 = vector.load %arg2[%c0_3, %c0_4] : memref<16x768xf32, #tpu.memory_space<vmem>>, vector<16x768xf32>
    %3 = arith.truncf %2 : vector<16x768xf32> to vector<16x768xbf16>
    %c0_5 = arith.constant 0 : index
    %c0_6 = arith.constant 0 : index
    %4 = vector.load %arg3[%c0_5, %c0_6] : memref<768x256xbf16, #tpu.memory_space<vmem>>, vector<768x256xbf16>
    %cst = arith.constant dense<0.000000e+00> : vector<16x256xf32>
    %5 = tpu.matmul %3, %4, %cst {dimension_numbers = #tpu.dot_dimension_numbers<[1], [0], [0], [1], [0, 0, 1, 1], [], []>} : vector<16x768xbf16>, vector<768x256xbf16>, vector<16x256xf32> -> vector<16x256xf32>
    %6 = vector.broadcast %1 : vector<1x256xf32> to vector<16x256xf32>
    %7 = arith.addf %5, %6 : vector<16x256xf32>
    %8 = arith.mulf %0, %7 : vector<16x256xf32>
    %cst_7 = arith.constant dense<0.000000e+00> : vector<16xf32>
    %9 = vector.multi_reduction <add>, %8, %cst_7 [1] : vector<16x256xf32> to vector<16xf32>
    %10 = vector.shape_cast %9 : vector<16xf32> to vector<16x1xf32>
    %11 = arith.mulf %0, %0 : vector<16x256xf32>
    %cst_8 = arith.constant dense<0.000000e+00> : vector<16xf32>
    %12 = vector.multi_reduction <add>, %11, %cst_8 [1] : vector<16x256xf32> to vector<16xf32>
    %13 = vector.shape_cast %12 : vector<16xf32> to vector<16x1xf32>
    %14 = arith.mulf %7, %7 : vector<16x256xf32>
    %cst_9 = arith.constant dense<0.000000e+00> : vector<16xf32>
    %15 = vector.multi_reduction <add>, %14, %cst_9 [1] : vector<16x256xf32> to vector<16xf32>
    %16 = vector.shape_cast %15 : vector<16xf32> to vector<16x1xf32>
    %17 = arith.mulf %13, %16 : vector<16x1xf32>
    %cst_10 = arith.constant 1.000000e-16 : f32
    %18 = vector.broadcast %cst_10 : f32 to vector<16x1xf32>
    %19 = arith.maximumf %17, %18 : vector<16x1xf32>
    %20 = math.rsqrt %19 : vector<16x1xf32>
    %21 = arith.mulf %10, %20 : vector<16x1xf32>
    %cst_11 = arith.constant 1.000000e+00 : f32
    %22 = vector.broadcast %cst_11 : f32 to vector<16x1xf32>
    %23 = arith.subf %22, %21 : vector<16x1xf32>
    %c16_i32 = arith.constant 16 : i32
    %24 = arith.muli %arg0, %c16_i32 : i32
    %25 = tpu.iota {dimensions = array<i32: 0>} : vector<16x1xi32>
    %26 = vector.broadcast %24 : i32 to vector<16x1xi32>
    %27 = arith.addi %26, %25 : vector<16x1xi32>
    %c50_i32 = arith.constant 50 : i32
    %28 = vector.broadcast %c50_i32 : i32 to vector<16x1xi32>
    %29 = arith.cmpi slt, %27, %28 : vector<16x1xi32>
    %cst_12 = arith.constant 0.000000e+00 : f32
    %30 = vector.broadcast %cst_12 : f32 to vector<16x1xf32>
    %31 = arith.select %29, %23, %30 : vector<16x1xi1>, vector<16x1xf32>
    %32 = vector.shape_cast %31 : vector<16x1xf32> to vector<1x16x1xf32>
    %cst_13 = arith.constant dense<0.000000e+00> : vector<1xf32>
    %33 = vector.multi_reduction <add>, %32, %cst_13 [1, 2] : vector<1x16x1xf32> to vector<1xf32>
    %34 = vector.shape_cast %33 : vector<1xf32> to vector<1x1x1xf32>
    %35 = vector.extract %34[0, 0, 0] : f32 from vector<1x1x1xf32>
    %36 = vector.broadcast %35 : f32 to vector<1x8x128xf32>
    %c0_14 = arith.constant 0 : index
    %c0_15 = arith.constant 0 : index
    %c0_16 = arith.constant 0 : index
    %37 = vector.load %arg5[%c0_14, %c0_15, %c0_16] : memref<1x8x128xf32, #tpu.memory_space<vmem>>, vector<1x8x128xf32>
    tpu.vector_store %arg5[%c0_14, %c0_15, %c0_16], %36 {strides = array<i32>} : memref<1x8x128xf32, #tpu.memory_space<vmem>>, vector<1x8x128xf32>,
    return
  }
  func.func @transform_0(%arg0: i32) -> (i32, i32) {
    %c0_i32 = arith.constant 0 : i32
    %c0_i32_0 = arith.constant 0 : i32
    return %arg0, %c0_i32 : i32, i32
  }
  func.func @transform_1(%arg0: i32) -> (i32, i32) {
    %c0_i32 = arith.constant 0 : i32
    %c0_i32_0 = arith.constant 0 : i32
    return %arg0, %c0_i32 : i32, i32
  }
  func.func @transform_2(%arg0: i32) -> (i32, i32) {
    %c0_i32 = arith.constant 0 : i32
    %c0_i32_0 = arith.constant 0 : i32
    %c0_i32_1 = arith.constant 0 : i32
    return %c0_i32, %c0_i32_0 : i32, i32
  }
  func.func @transform_3(%arg0: i32) -> (i32, i32) {
    %c0_i32 = arith.constant 0 : i32
    %c0_i32_0 = arith.constant 0 : i32
    %c0_i32_1 = arith.constant 0 : i32
    return %c0_i32, %c0_i32_0 : i32, i32
  }
  func.func @transform_4(%arg0: i32) -> (i32, i32, i32) {
    %c0_i32 = arith.constant 0 : i32
    %c0_i32_0 = arith.constant 0 : i32
    %c0_i32_1 = arith.constant 0 : i32
    return %arg0, %c0_i32, %c0_i32_0 : i32, i32, i32
  }
}

</mosaic_0001>

<bundles_post_ra>
// kernel: tpu_custom_call.1
= control target key start
LH: loop header
LB: loop body
LE: loop exit
PB: predicated region body
PF: predicated region fallthrough
CT: control target
= control target key end

     0   :  { %9 = vsyncpa [#allocation3], 0  ;;  %s1990_s0 = inlined_call_operand.hbm [shape: f32[50,256], index: 0, kind: input, shape index: {}]   ;;  %s1991_s1 = inlined_call_operand.hbm [shape: f32[50,768], index: 1, kind: input, shape index: {}]   ;;  %s1992_s2 = inlined_call_operand.hbm [shape: bf16[768,256], index: 2, kind: input, shape index: {}]   ;;  %s1993_s3 = inlined_call_operand.vmem [shape: f32[1,256], index: 3, kind: input, shape index: {}]   ;;  %s1994_s4 = inlined_call_operand.hbm [shape: f32[4,8,128], index: 4, kind: output, shape index: {}]  }
   0x1   :  { %11 = vsyncpa [#allocation3 + $0x1], 0 }
   0x2   :  { %12 = vsyncpa [#allocation6], 0 }
   0x3   :  { %14 = vsyncpa [#allocation6 + $0x1], 0 }
   0x4   :  { %15 = vsyncpa [#allocation4], 0 }
   0x5   :  { %17 = vsyncpa [#allocation4 + $0x1], 0  ;;  %s1745_s15 = smov 0   ;;  %s1747_s16 = smov 0  }
   0x6   :  { %s1749_s17 = smov 0   ;;  %s1751_s18 = smov 0  }
   0x7 LB: > { %s1766_s19 = sadd.s32 4294967295, %s1708_s18   ;;  %s1219_s20 = sadd.s32 4294967294, %s1708_s18   ;;  %s1708_s18 = sphi %s1751_s18, %s2011_s18   ;;  %s1704_s17 = sphi %s1749_s17, %s2010_s17   ;;  %s1700_s16 = sphi %s1747_s16, %s2009_s16   ;;  %s1696_s15 = sphi %s1745_s15, %s2008_s15  }
   0x8   : > { %s1770_s21 = sadd.s32 1, %s1708_s18   ;;  %s30_s22 = sadd.s32 1, %s1704_s17 }
   0x9   : > { %s27_s23 = ssub.s32 %s1708_s18, %s1770_s21  ;;  %p37_p0 = scmp.ne.s32.totalorder %s1704_s17, %s1700_s16 }
   0xa   : > { %p28_p1 = scmp.eq.s32.totalorder %s27_s23, 0  ;;  %p38_p2 = scmp.eq.s32.totalorder %s1708_s18, 0 }
   0xb   : > { %p43_p3 = scmp.ne.s32.totalorder %s1700_s16, %s1696_s15  ;;  %p1997_p4 = scmp.eq.s32.totalorder %s1766_s19, 0 }
   0xc   : > { %s1782_s24 = scalar_select %p28_p1, %s1704_s17, %s30_s22  }
   0xd   : > { %p1784_p5 = por %p38_p2, %p37_p0  ;;  %p1790_p6 = por %p1997_p4, %p43_p3 }
   0xe   : > { %p135_p7 = scmp.eq.s32.totalorder %s1766_s19, 3  ;;  %p141_p8 = scmp.eq.s32.totalorder %s1219_s20, 3 }
   0xf   : > { %s1999_s26 = scalar_select %p1790_p6, 1, 0 }
  0x10   : > { %p1220_p9 = scmp.ge.s32.totalorder %s1708_s18, 1  ;;  %p148_p10 = scmp.lt.s32.totalorder %s1708_s18, 5 }
  0x11   : > { %p1797_p11 = por %p135_p7, %p37_p0  ;;  %p1801_p12 = por %p141_p8, %p43_p3 }
  0x12   : > { %p1805_p13 = pnand %p1220_p9, %p148_p10  ;;  %s1710_s30 = smov [#allocation7]  }
  0x13   : > { %s2000_s27 = scalar_select %p1797_p11, 1, 0 }
  0x14   : > { %s2001_s28 = scalar_select %p1801_p12, 1, 0 }
  0x15   : > { %p1360_p1 = pneg %p1805_p13  ;;  %s160_s5 = sshll.u32 %s1710_s30, 4  ;;  %s161_s5 = int_to_ptr.vmem [resolvable:$true] %s160_s5 }
  0x16   : > { %s1569_s6 = scalar_lea.vmem %s161_s5, 12288  ;;  %p1577_p8 = scmp.lt.s32.totalorder %s161_s5, %s161_s5 }
  0x17   : > { %p1361_p2 = pnand %p1360_p1, %p1997_p4  ;;  %p1570_p7 = scmp.ne.s32.totalorder %s161_s5, %s1569_s6 }
  0x18   : > { %p1578_p6 = scmp.lt.s32.totalorder %s1569_s6, %s1569_s6 }
  0x19   : > { %p1560_p0 = pneg %p1361_p2 }
  0x1a   : > { %p1579_p12 = por %p1578_p6, %p1577_p8 }
  0x1b   : > { %p1572_p11 = pnand %p1570_p7, %p1560_p0 }
  0x1d   : > { %p1573_p3 = pneg %p1572_p11 }
  0x1f   : > { %p1580_p9 = pnand %p1579_p12, %p1573_p3 }
  0x21   : > { %1583 = shalt.err (!%p1580_p9)
}
  0x22   : > { %s1711_s7 = smov 128   ;;  %s1712_s8 = smov 8  }
  0x23   : > { %1363 = dma.hbm_to_vmem [thread:$0]  (!%p1361_p2), %s1992_s2, 12288, %s161_s5, [#allocation6], %s1711_s7, %s1711_s7, %s1712_s8  }
  0x24   : > { %p1222_p10 = scmp.ge.s32.totalorder %s1708_s18, 4 }
  0x26   : > { %173 = sbr.rel (%p1222_p10) target bundleno = 109 (0x6d), region = 24 }
  0x2b   : > { %176 = sbr.rel (!%p1784_p5) target bundleno = 75 (0x4b), region = 28  ;;  %s177_s11 = sand.u32 (%p1784_p5), 1, %s1704_s17  }
  0x2c   : > { %s1224_s12 = sshll.u32 (%p1784_p5), %s1708_s18, 1  ;;  %s1223_s13 = sshll.u32 (%p1784_p5), %s177_s11, 5 }
  0x2d   : > { %s183_s14 = ssub.s32 (%p1784_p5), 7, %s1224_s12  ;;  %s1824_s23 = scalar_lea.sflag (%p1784_p5), [#allocation3], %s177_s11 }
  0x2e   : > { %p184_p6 = scmp.lt.s32.totalorder (%p1784_p5), %s183_s14, 2  ;;  %s181_s30 = scalar_lea.vmem (%p1784_p5), [#allocation2], %s1223_s13 }
  0x30   : > { %s2013_s14 = smov (!%p184_p6, %s183_s14), 2 }
  0x31   : > { %s1821_s20 = sshll.u32 %s2013_s14, 8 }
  0x32   : > { %s189_s22 = ssub.s32 512, %s1821_s20 }
  0x33   : > { %190 = vsyncadd %s1824_s23, %s189_s22  ;;  %p1227_p11 = scmp.ne.s32.totalorder %s1821_s20, 0  ;;  %s1346_s5 = sshll.u32 %s1708_s18, 9 }
  0x34   : > { %s1832_s8 = scalar_lea.hbm %s1990_s0, %s1346_s5  ;;  %s196_s9 = sshll.u32 %s181_s30, 4  ;;  %s1834_s9 = int_to_ptr.vmem [resolvable:$true] %s196_s9 }
  0x35   : > { %s1584_s10 = scalar_lea.hbm %s1832_s8, %s1821_s20  ;;  %s1588_s13 = scalar_lea.hbm %s1990_s0, 1792 }
  0x36   : > { %p1585_p12 = scmp.ne.s32.totalorder %s1832_s8, %s1584_s10  ;;  %p1589_p0 = scmp.lt.s32.totalorder %s1832_s8, %s1990_s0 }
  0x37   : > { %p1590_p7 = scmp.lt.s32.totalorder %s1588_s13, %s1584_s10 }
  0x38   : > { %p1586_p1 = pnand %p1585_p12, %p1227_p11 }
  0x39   : > { %p1591_p3 = por %p1590_p7, %p1589_p0 }
  0x3a   : > { %p1587_p2 = pneg %p1586_p1 }
  0x3c   : > { %p1592_p8 = pnand %p1591_p3, %p1587_p2 }
  0x3e   : > { %1595 = shalt.err (!%p1592_p8)
}
  0x3f   : > { %s1596_s30 = scalar_lea.vmem %s1834_s9, %s1821_s20  ;;  %s1713_s5 = smov [#allocation2]  }
  0x40   : > { %p1597_p9 = scmp.ne.s32.totalorder %s1834_s9, %s1596_s30  ;;  %s1600_s6 = sshll.u32 %s1713_s5, 4  ;;  %s1601_s6 = int_to_ptr.vmem [resolvable:$false] %s1600_s6 }
  0x41   : > { %s1602_s7 = scalar_lea.vmem %s1601_s6, 1024  ;;  %p1603_p12 = scmp.lt.s32.totalorder %s1834_s9, %s1601_s6 }
  0x42   : > { %p1598_p10 = pnand %p1597_p9, %p1227_p11  ;;  %p1604_p1 = scmp.lt.s32.totalorder %s1602_s7, %s1596_s30 }
  0x44   : > { %p1599_p6 = pneg %p1598_p10  ;;  %p1605_p4 = por %p1604_p1, %p1603_p12 }
  0x46   : > { %p1606_p0 = pnand %p1605_p4, %p1599_p6 }
  0x48   : > { %1609 = shalt.err (!%p1606_p0)
}
  0x49   : > { %s1714_s10 = smov 256   ;;  %s1715_s11 = smov 16  }
  0x4a   : > { %202 = dma.hbm_to_vmem [thread:$0]  (%p1227_p11), %s1832_s8, %s1821_s20, %s1834_s9, %s1824_s23, %s1714_s10, %s1714_s10, %s1715_s11  }
  0x4b PF: > { %205 = sbr.rel (!%p1784_p5) target bundleno = 109 (0x6d), region = 32  ;;  %s206_s12 = sand.u32 (%p1784_p5), 1, %s1708_s18  }
  0x4c   : > { %s208_s13 = sand.u32 (%p1784_p5), 1, %s1704_s17   ;;  %s1232_s22 = sshll.u32 (%p1784_p5), %s1708_s18, 1 }
  0x4d   : > { %s1347_s14 = smul.u32 (%p1784_p5), 96, %s208_s13  ;;  %s212_s30 = ssub.s32 (%p1784_p5), 7, %s1232_s22 }
  0x4e   : > { %p213_p4 = scmp.lt.s32.totalorder (%p1784_p5), %s212_s30, 2  ;;  %s1868_s7 = scalar_lea.sflag (%p1784_p5), [#allocation6], %s206_s12 }
  0x4f   : > { %s210_s20 = scalar_lea.vmem (%p1784_p5), [#allocation5], %s1347_s14 }
  0x50   : > { %s2015_s30 = smov (!%p213_p4, %s212_s30), 2 }
  0x51   : > { %s1865_s5 = smul.u32 768, %s2015_s30 }
  0x53   : > { %s218_s6 = ssub.s32 1536, %s1865_s5 }
  0x54   : > { %219 = vsyncadd %s1868_s7, %s218_s6  ;;  %p1235_p5 = scmp.ne.s32.totalorder %s1865_s5, 0  ;;  %s1348_s25 = smul.u32 1536, %s1708_s18 }
  0x55   : > { %s225_s23 = sshll.u32 %s210_s20, 4  ;;  %s1614_s14 = scalar_lea.hbm %s1991_s1, 5376  ;;  %s1878_s23 = int_to_ptr.vmem [resolvable:$true] %s225_s23 }
  0x56   : > { %s1876_s10 = scalar_lea.hbm %s1991_s1, %s1348_s25 }
  0x57   : > { %s1610_s11 = scalar_lea.hbm %s1876_s10, %s1865_s5  ;;  %p1615_p3 = scmp.lt.s32.totalorder %s1876_s10, %s1991_s1 }
  0x58   : > { %p1611_p11 = scmp.ne.s32.totalorder %s1876_s10, %s1610_s11  ;;  %p1616_p8 = scmp.lt.s32.totalorder %s1614_s14, %s1610_s11 }
  0x5a   : > { %p1612_p2 = pnand %p1611_p11, %p1235_p5  ;;  %p1617_p9 = por %p1616_p8, %p1615_p3 }
  0x5c   : > { %p1613_p7 = pneg %p1612_p2 }
  0x5e   : > { %p1618_p10 = pnand %p1617_p9, %p1613_p7 }
  0x60   : > { %1621 = shalt.err (!%p1618_p10)
}
  0x61   : > { %s1622_s6 = scalar_lea.vmem %s1878_s23, %s1865_s5  ;;  %s1716_s20 = smov [#allocation5]  }
  0x62   : > { %p1623_p6 = scmp.ne.s32.totalorder %s1878_s23, %s1622_s6  ;;  %s1626_s25 = sshll.u32 %s1716_s20, 4  ;;  %s1627_s25 = int_to_ptr.vmem [resolvable:$false] %s1626_s25 }
  0x63   : > { %s1628_s8 = scalar_lea.vmem %s1627_s25, 3072  ;;  %p1629_p0 = scmp.lt.s32.totalorder %s1878_s23, %s1627_s25 }
  0x64   : > { %p1624_p12 = pnand %p1623_p6, %p1235_p5  ;;  %p1630_p4 = scmp.lt.s32.totalorder %s1628_s8, %s1622_s6 }
  0x66   : > { %p1625_p1 = pneg %p1624_p12  ;;  %p1631_p11 = por %p1630_p4, %p1629_p0 }
  0x68   : > { %p1632_p2 = pnand %p1631_p11, %p1625_p1 }
  0x6a   : > { %1635 = shalt.err (!%p1632_p2)
}
  0x6b   : > { %s1717_s9 = smov 768   ;;  %s1718_s11 = smov 48  }
  0x6c   : > { %231 = dma.hbm_to_vmem [thread:$0]  (%p1235_p5), %s1876_s10, %s1865_s5, %s1878_s23, %s1868_s7, %s1717_s9, %s1717_s9, %s1718_s11  }
  0x6d PF: > { %237 = sbr.rel (%p1805_p13) target bundleno = 834 (0x342), region = 36  ;;  %s1907_s12 = sand.u32 (!%p1805_p13), 1, %s1700_s16  }
  0x6e   : > { %s1240_s13 = sshll.u32 (!%p1805_p13), %s1907_s12, 5  ;;  %s240_s14 = scalar_lea.sflag (!%p1805_p13), [#allocation3], %s1907_s12 }
  0x6f   : > { %s1911_s22 = scalar_lea.vmem (!%p1805_p13), [#allocation2], %s1240_s13  ;;  %p2003_p7 = scmp.ne.s32.totalorder (!%p1805_p13), %s1999_s26, 0 }
  0x72   : > { %1679 = dma.done.wait (%p2003_p7), %s240_s14, 512  }
  0x73   : > { %1681 = vsyncadd (%p2003_p7), %s240_s14, 4294966784  ;;  %s248_s29 = sand.u32 1, %s1766_s19   ;;  %s1349_s5 = smul.u32 96, %s1907_s12 }
  0x74   : > { %s249_s7 = scalar_lea.sflag [#allocation6], %s248_s29 }
  0x75   : > { %s1919_s23 = scalar_lea.vmem [#allocation5], %s1349_s5 }
  0x76   : > { %1683 = dma.done.wait (%p2003_p7), %s249_s7, 1536  }
  0x77   : > { %1685 = vsyncadd (%p2003_p7), %s249_s7, 4294965760  ;;  %p2004_p13 = scmp.eq.s32.totalorder %s1766_s19, 0 }
  0x79   : > { %1687 = dma.done.wait (%p2004_p13), [#allocation6], 12288   ;;  %p2005_p5 = pmov %p2004_p13 }
  0x7a   : > { %v1410_v0 = vld [vmem:[#allocation7 + $0x74] ss:$8 sps:$4 sm:$0xff]   ;;  %v1412_v1 = vld [vmem:[#allocation7 + $0x70] ss:$8 sps:$4 sm:$0xff]   ;;  %v1416_v4 = vld [vmem:[#allocation7 + $0x64] ss:$8 sps:$4 sm:$0xff]  }
  0x7b   : > { %1689 = vsyncadd (%p2005_p5), [#allocation6], 4294955008  ;;  %908 = vmatprep.subr.bf16.mxu0 %v1410_v0  ;;  %v1413_v2 = vld [vmem:[#allocation7 + $0x174] ss:$8 sps:$4 sm:$0xff]   ;;  %v1415_v3 = vld [vmem:[#allocation7 + $0x170] ss:$8 sps:$4 sm:$0xff]  }
  0x7c   : > { %909 = vmatpush1.bf16.msra.mxu0 %v1412_v1  ;;  %v1418_v5 = vld [vmem:[#allocation7 + $0x60] ss:$8 sps:$4 sm:$0xff]   ;;  %951 = vmatprep.subr.bf16.mxu1 %v1413_v2  ;;  %v1419_v6 = vld [vmem:[#allocation7 + $0x164] ss:$8 sps:$4 sm:$0xff]   ;;  %v1422_v8 = vld [vmem:[#allocation7 + $0x54] ss:$8 sps:$4 sm:$0xff]  }
  0x7d   : > { %952 = vmatpush1.bf16.msra.mxu1 %v1415_v3  ;;  %910 = vmatprep.subr.bf16.mxu0 %v1416_v4  ;;  %v1421_v7 = vld [vmem:[#allocation7 + $0x160] ss:$8 sps:$4 sm:$0xff]   ;;  %v1424_v9 = vld [vmem:[#allocation7 + $0x50] ss:$8 sps:$4 sm:$0xff]   ;;  %v1425_v10 = vld [vmem:[#allocation7 + $0x154] ss:$8 sps:$4 sm:$0xff]  }
  0x7e   : > { %953 = vmatprep.subr.bf16.mxu1 %v1419_v6  ;;  %v1428_v11 = vld [vmem:[#allocation7 + $0x44] ss:$8 sps:$4 sm:$0xff]   ;;  %v1427_v12 = vld [vmem:[#allocation7 + $0x150] ss:$8 sps:$4 sm:$0xff]   ;;  %v1430_v14 = vld [vmem:[#allocation7 + $0x40] ss:$8 sps:$4 sm:$0xff]  }
  0x7f   : > { %v1431_v13 = vld [vmem:[#allocation7 + $0x144] ss:$8 sps:$4 sm:$0xff]   ;;  %v1434_v15 = vld [vmem:[#allocation7 + $0x34] ss:$8 sps:$4 sm:$0xff]   ;;  %v1433_v16 = vld [vmem:[#allocation7 + $0x140] ss:$8 sps:$4 sm:$0xff]  }
  0x80   : > { %911 = vmatpush1.bf16.msra.mxu0 %v1418_v5  ;;  %v1437_v17 = vld [vmem:[#allocation7 + $0x134] ss:$8 sps:$4 sm:$0xff]   ;;  %v1436_v18 = vld [vmem:[#allocation7 + $0x30] ss:$8 sps:$4 sm:$0xff]   ;;  %v1440_v19 = vld [vmem:[#allocation7 + $0x24] ss:$8 sps:$4 sm:$0xff]  }
  0x81   : > { %912 = vmatprep.subr.bf16.mxu0 %v1422_v8  ;;  %954 = vmatpush1.bf16.msra.mxu1 %v1421_v7  ;;  %v1439_v20 = vld [vmem:[#allocation7 + $0x130] ss:$8 sps:$4 sm:$0xff]   ;;  %v1443_v21 = vld [vmem:[#allocation7 + $0x124] ss:$8 sps:$4 sm:$0xff]   ;;  %v1442_v22 = vld [vmem:[#allocation7 + $0x20] ss:$8 sps:$4 sm:$0xff]  }
  0x82   : > { %955 = vmatprep.subr.bf16.mxu1 %v1425_v10  ;;  %v1446_v23 = vld [vmem:[#allocation7 + $0x14] ss:$8 sps:$4 sm:$0xff]   ;;  %v1445_v24 = vld [vmem:[#allocation7 + $0x120] ss:$8 sps:$4 sm:$0xff]   ;;  %v1448_v26 = vld [vmem:[#allocation7 + $0x10] ss:$8 sps:$4 sm:$0xff]  }
  0x83   : > { %v1449_v25 = vld [vmem:[#allocation7 + $0x114] ss:$8 sps:$4 sm:$0xff]   ;;  %v1452_v27 = vld [vmem:[#allocation7 + $0x4] ss:$8 sps:$4 sm:$0xff]   ;;  %v1451_v28 = vld [vmem:[#allocation7 + $0x110] ss:$8 sps:$4 sm:$0xff]  }
  0x84   : > { %913 = vmatpush1.bf16.msra.mxu0 %v1424_v9  ;;  %v1455_v29 = vld [vmem:[#allocation7 + $0x104] ss:$8 sps:$4 sm:$0xff]   ;;  %v1454_v30 = vld [vmem:[#allocation7] ss:$8 sps:$4 sm:$0xff]   ;;  %v1458_v31 = vld [vmem:[#allocation7 + $0xf4] ss:$8 sps:$4 sm:$0xff]  }
  0x85   : > { %914 = vmatprep.subr.bf16.mxu0 %v1428_v11  ;;  %956 = vmatpush1.bf16.msra.mxu1 %v1427_v12  ;;  %v1457_v32 = vld [vmem:[#allocation7 + $0x100] ss:$8 sps:$4 sm:$0xff]   ;;  %v1461_v33 = vld [vmem:[#allocation7 + $0x1f4] ss:$8 sps:$4 sm:$0xff]   ;;  %v1460_v34 = vld [vmem:[#allocation7 + $0xf0] ss:$8 sps:$4 sm:$0xff]  }
  0x86   : > { %957 = vmatprep.subr.bf16.mxu1 %v1431_v13  ;;  %v1464_v35 = vld [vmem:[#allocation7 + $0xe4] ss:$8 sps:$4 sm:$0xff]   ;;  %v1463_v36 = vld [vmem:[#allocation7 + $0x1f0] ss:$8 sps:$4 sm:$0xff]   ;;  %v1466_v38 = vld [vmem:[#allocation7 + $0xe0] ss:$8 sps:$4 sm:$0xff]  }
  0x87   : > { %v1467_v37 = vld [vmem:[#allocation7 + $0x1e4] ss:$8 sps:$4 sm:$0xff]   ;;  %v1470_v39 = vld [vmem:[#allocation7 + $0xd4] ss:$8 sps:$4 sm:$0xff]   ;;  %v1469_v40 = vld [vmem:[#allocation7 + $0x1e0] ss:$8 sps:$4 sm:$0xff]  }
  0x88   : > { %915 = vmatpush1.bf16.msra.mxu0 %v1430_v14  ;;  %v1473_v41 = vld [vmem:[#allocation7 + $0x1d4] ss:$8 sps:$4 sm:$0xff]   ;;  %v1472_v42 = vld [vmem:[#allocation7 + $0xd0] ss:$8 sps:$4 sm:$0xff]   ;;  %v1476_v43 = vld [vmem:[#allocation7 + $0xc4] ss:$8 sps:$4 sm:$0xff]  }
  0x89   : > { %916 = vmatprep.subr.bf16.mxu0 %v1434_v15  ;;  %958 = vmatpush1.bf16.msra.mxu1 %v1433_v16  ;;  %v1475_v44 = vld [vmem:[#allocation7 + $0x1d0] ss:$8 sps:$4 sm:$0xff]   ;;  %v1479_v45 = vld [vmem:[#allocation7 + $0x1c4] ss:$8 sps:$4 sm:$0xff]   ;;  %v1478_v48 = vld [vmem:[#allocation7 + $0xc0] ss:$8 sps:$4 sm:$0xff]  }
  0x8a   : > { %959 = vmatprep.subr.bf16.mxu1 %v1437_v17  ;;  %v304_v46 = vld [vmem:[%s1919_s23 + $0x8] sm:$0xff]  ;;  %v310_v47 = vld [vmem:[%s1919_s23 + $0x38] sm:$0xff]  ;;  %v303_v5 = vld [vmem:[%s1919_s23] sm:$0xff]  ;;  %s1339_s30 = sshll.u32 %s1766_s19, 4  ;;  %vm1088_vm2 = vcmask 7168   ;;  %s1242_s6 = sshll.u32 %s1907_s12, 3 }
  0x8b   : > { %v316_v49 = vpack.c.bf16 %v310_v47, %v304_v46  ;;  %v1482_v50 = vld [vmem:[#allocation7 + $0xb4] ss:$8 sps:$4 sm:$0xff]   ;;  %v1481_v51 = vld [vmem:[#allocation7 + $0x1c0] ss:$8 sps:$4 sm:$0xff]   ;;  %v1484_v56 = vld [vmem:[#allocation7 + $0xb0] ss:$8 sps:$4 sm:$0xff]  }
  0x8c   : > { %917 = vmatpush1.bf16.msra.mxu0 %v1436_v18  ;;  %v306_v52 = vld [vmem:[%s1919_s23 + $0x18] sm:$0xff]  ;;  %v312_v53 = vld [vmem:[%s1919_s23 + $0x48] sm:$0xff]  ;;  %v309_v7 = vld [vmem:[%s1919_s23 + $0x30] sm:$0xff]  ;;  %s285_s20 = scalar_lea.vmem [#allocation8], %s1242_s6  ;;  %s1341_s8 = sshll.u32 %s1766_s19, 7 }
  0x8d   : > { %918 = vmatprep.subr.bf16.mxu0 %v1440_v19  ;;  %960 = vmatpush1.bf16.msra.mxu1 %v1439_v20  ;;  %v1485_v54 = vld [vmem:[#allocation7 + $0x1b4] ss:$8 sps:$4 sm:$0xff]   ;;  %v318_v55 = vpack.c.bf16 %v312_v53, %v306_v52  ;;  %v1488_v57 = vld [vmem:[#allocation7 + $0xa4] ss:$8 sps:$4 sm:$0xff]   ;;  %v1487_v58 = vld [vmem:[#allocation7 + $0x1b0] ss:$8 sps:$4 sm:$0xff]   ;;  %v315_v11 = vpack.c.bf16 %v309_v7, %v303_v5  ;;  %s1115_s14 = scalar_lea.hbm %s1994_s4, %s1341_s8 }
  0x8e   : > { %961 = vmatprep.subr.bf16.mxu1 %v1443_v21  ;;  %940 = vmatprep.mubr.bf16.mxu0 %v316_v49  ;;  %v1491_v59 = vld [vmem:[#allocation7 + $0x1a4] ss:$8 sps:$4 sm:$0xff]   ;;  %v1490_v60 = vld [vmem:[#allocation7 + $0xa0] ss:$8 sps:$4 sm:$0xff]   ;;  %v1494_v61 = vld [vmem:[#allocation7 + $0x94] ss:$8 sps:$4 sm:$0xff]  }
  0x8f   : > { %983 = vmatprep.mubr.bf16.mxu1 %v318_v55  ;;  %v1493_v62 = vld [vmem:[#allocation7 + $0x1a0] ss:$8 sps:$4 sm:$0xff]   ;;  %v1497_v63 = vld [vmem:[#allocation7 + $0x194] ss:$8 sps:$4 sm:$0xff]   ;;  %v1496_v0 = vld [vmem:[#allocation7 + $0x90] ss:$8 sps:$4 sm:$0xff]  }
  0x90   : > { %919 = vmatpush1.bf16.msra.mxu0 %v1442_v22  ;;  %v1499_v1 = vld [vmem:[#allocation7 + $0x190] ss:$8 sps:$4 sm:$0xff]   ;;  %v1500_v2 = vld [vmem:[#allocation7 + $0x84] ss:$8 sps:$4 sm:$0xff]   ;;  %v1502_v3 = vld [vmem:[#allocation7 + $0x80] ss:$8 sps:$4 sm:$0xff]  }
  0x91   : > { %920 = vmatprep.subr.bf16.mxu0 %v1446_v23  ;;  %962 = vmatpush1.bf16.msra.mxu1 %v1445_v24  ;;  %v1503_v4 = vld [vmem:[#allocation7 + $0x184] ss:$8 sps:$4 sm:$0xff]   ;;  %v1505_v6 = vld [vmem:[#allocation7 + $0x180] ss:$8 sps:$4 sm:$0xff]   ;;  %v1508_v8 = vld [vmem:[#allocation7 + $0x274] ss:$8 sps:$4 sm:$0xff]  }
  0x92   : > { %963 = vmatprep.subr.bf16.mxu1 %v1449_v25  ;;  %v305_v9 = vld [vmem:[%s1919_s23 + $0x10] sm:$0xff]  ;;  %v311_v10 = vld [vmem:[%s1919_s23 + $0x40] sm:$0xff]  ;;  %v308_v15 = vld [vmem:[%s1919_s23 + $0x28] sm:$0xff]  ;;  %s1117_s25 = sshll.u32 %s285_s20, 4  ;;  %p2006_p8 = scmp.ne.s32.totalorder %s2000_s27, 0  ;;  %s1951_s25 = int_to_ptr.vmem [resolvable:$true] %s1117_s25 }
  0x93   : > { %v1506_v12 = vld [vmem:[#allocation7 + $0x270] ss:$8 sps:$4 sm:$0xff]   ;;  %v317_v13 = vpack.c.bf16 %v311_v10, %v305_v9  ;;  %v1511_v14 = vld [vmem:[#allocation7 + $0x264] ss:$8 sps:$4 sm:$0xff]   ;;  %v1509_v16 = vld [vmem:[#allocation7 + $0x260] ss:$8 sps:$4 sm:$0xff]  }
  0x94   : > { %921 = vmatpush1.bf16.msra.mxu0 %v1448_v26  ;;  %v314_v17 = vld [vmem:[%s1919_s23 + $0x58] sm:$0xff]  ;;  %v1517_v21 = vld [vmem:[#allocation7 + $0x244] ss:$8 sps:$4 sm:$0xff]   ;;  %v1515_v22 = vld [vmem:[#allocation7 + $0x240] ss:$8 sps:$4 sm:$0xff]   ;;  %s1636_s29 = scalar_lea.vmem %s1951_s25, 128 }
  0x95   : > { %922 = vmatprep.subr.bf16.mxu0 %v1452_v27  ;;  %964 = vmatpush1.bf16.msra.mxu1 %v1451_v28  ;;  %v1514_v18 = vld [vmem:[#allocation7 + $0x254] ss:$8 sps:$4 sm:$0xff]   ;;  %v320_v19 = vpack.c.bf16 %v314_v17, %v308_v15  ;;  %v1512_v20 = vld [vmem:[#allocation7 + $0x250] ss:$8 sps:$4 sm:$0xff]   ;;  %v1523_v25 = vld [vmem:[#allocation7 + $0x224] ss:$8 sps:$4 sm:$0xff]   ;;  %p1637_p3 = scmp.ne.s32.totalorder %s1951_s25, %s1636_s29 }
  0x96   : > { %965 = vmatprep.subr.bf16.mxu1 %v1455_v29  ;;  %v1520_v23 = vld [vmem:[#allocation7 + $0x234] ss:$8 sps:$4 sm:$0xff]   ;;  %v1518_v24 = vld [vmem:[#allocation7 + $0x230] ss:$8 sps:$4 sm:$0xff]   ;;  %v1521_v26 = vld [vmem:[#allocation7 + $0x220] ss:$8 sps:$4 sm:$0xff]  }
  0x97   : > { %v1526_v27 = vld [vmem:[#allocation7 + $0x214] ss:$8 sps:$4 sm:$0xff]   ;;  %v1524_v28 = vld [vmem:[#allocation7 + $0x210] ss:$8 sps:$4 sm:$0xff]   ;;  %v1529_v29 = vld [vmem:[#allocation7 + $0x204] ss:$8 sps:$4 sm:$0xff]   ;;  %p1638_p9 = pnand %p1637_p3, %p2006_p8 }
  0x98   : > { %923 = vmatpush1.bf16.msra.mxu0 %v1454_v30  ;;  %v1527_v30 = vld [vmem:[#allocation7 + $0x200] ss:$8 sps:$4 sm:$0xff]   ;;  %v300_v55 = vld [vmem:[%s1911_s22 + $0x10] sm:$0xff]  ;;  %s1719_s5 = smov [#allocation8]  }
  0x99   : > { %924 = vmatprep.subr.bf16.mxu0 %v1458_v31  ;;  %966 = vmatpush1.bf16.msra.mxu1 %v1457_v32  ;;  %v1532_v31 = vld [vmem:[#allocation7 + $0x2f4] ss:$8 sps:$4 sm:$0xff]   ;;  %v1530_v32 = vld [vmem:[#allocation7 + $0x2f0] ss:$8 sps:$4 sm:$0xff]   ;;  %v1551_v46 = vld [vmem:[#allocation7 + $0x280] ss:$8 sps:$4 sm:$0xff]   ;;  %p1639_p10 = pneg %p1638_p9 }
  0x9a   : > { %967 = vmatprep.subr.bf16.mxu1 %v1461_v33  ;;  %v1535_v33 = vld [vmem:[#allocation7 + $0x2e4] ss:$8 sps:$4 sm:$0xff]   ;;  %s1640_s19 = sshll.u32 %s1719_s5, 4  ;;  %s1641_s19 = int_to_ptr.vmem [resolvable:$false] %s1640_s19 }
  0x9b   : > { %v307_v47 = vld [vmem:[%s1919_s23 + $0x20] sm:$0xff]  ;;  %s1642_s7 = scalar_lea.vmem %s1641_s19, 256  ;;  %p1643_p6 = scmp.lt.s32.totalorder %s1951_s25, %s1641_s19 }
  0x9c   : > { %925 = vmatpush2.bf16.msra.mxu0 %v1460_v34  ;;  %v1533_v34 = vld [vmem:[#allocation7 + $0x2e0] ss:$8 sps:$4 sm:$0xff]   ;;  %p1644_p12 = scmp.lt.s32.totalorder %s1642_s7, %s1636_s29 }
  0x9d   : > { %926 = vmatprep.subr.bf16.mxu0 %v1464_v35  ;;  %968 = vmatpush2.bf16.msra.mxu1 %v1463_v36  ;;  %v1538_v35 = vld [vmem:[#allocation7 + $0x2d4] ss:$8 sps:$4 sm:$0xff]   ;;  %v1536_v36 = vld [vmem:[#allocation7 + $0x2d0] ss:$8 sps:$4 sm:$0xff]  }
  0x9e   : > { %969 = vmatprep.subr.bf16.mxu1 %v1467_v37  ;;  %v1541_v37 = vld [vmem:[#allocation7 + $0x2c4] ss:$8 sps:$4 sm:$0xff]   ;;  %p1645_p1 = por %p1644_p12, %p1643_p6 }
  0xa0   : > { %927 = vmatpush2.bf16.msra.mxu0 %v1466_v38  ;;  %v1539_v38 = vld [vmem:[#allocation7 + $0x2c0] ss:$8 sps:$4 sm:$0xff]   ;;  %p1646_p0 = pnand %p1645_p1, %p1639_p10 }
  0xa1   : > { %928 = vmatprep.subr.bf16.mxu0 %v1470_v39  ;;  %970 = vmatpush2.bf16.msra.mxu1 %v1469_v40  ;;  %v1544_v39 = vld [vmem:[#allocation7 + $0x2b4] ss:$8 sps:$4 sm:$0xff]   ;;  %v1542_v40 = vld [vmem:[#allocation7 + $0x2b0] ss:$8 sps:$4 sm:$0xff]  }
  0xa2   : > { %971 = vmatprep.subr.bf16.mxu1 %v1473_v41  ;;  %v1547_v41 = vld [vmem:[#allocation7 + $0x2a4] ss:$8 sps:$4 sm:$0xff]  }
  0xa4   : > { %929 = vmatpush2.bf16.msra.mxu0 %v1472_v42  ;;  %v1545_v42 = vld [vmem:[#allocation7 + $0x2a0] ss:$8 sps:$4 sm:$0xff]  }
  0xa5   : > { %930 = vmatprep.subr.bf16.mxu0 %v1476_v43  ;;  %972 = vmatpush2.bf16.msra.mxu1 %v1475_v44  ;;  %v1550_v43 = vld [vmem:[#allocation7 + $0x294] ss:$8 sps:$4 sm:$0xff]   ;;  %v1548_v44 = vld [vmem:[#allocation7 + $0x290] ss:$8 sps:$4 sm:$0xff]  }
  0xa6   : > { %973 = vmatprep.subr.bf16.mxu1 %v1479_v45  ;;  %v1553_v45 = vld [vmem:[#allocation7 + $0x284] ss:$8 sps:$4 sm:$0xff]  }
  0xa8   : > { %931 = vmatpush2.bf16.msra.mxu0 %v1478_v48  ;;  %v313_v48 = vld [vmem:[%s1919_s23 + $0x50] sm:$0xff] }
  0xa9   : > { %932 = vmatprep.subr.bf16.mxu0 %v1482_v50  ;;  %974 = vmatpush2.bf16.msra.mxu1 %v1481_v51  ;;  %v319_v49 = vpack.c.bf16 %v313_v48, %v307_v47  ;;  %v298_v50 = vld [vmem:[%s1911_s22] sm:$0xff]  ;;  %v299_v51 = vld [vmem:[%s1911_s22 + $0x8] sm:$0xff]  ;;  %v1081_v47 = vstv %s1339_s30 }
  0xaa   : > { %975 = vmatprep.subr.bf16.mxu1 %v1485_v54  ;;  %v1047_v52 = vmul.f32 %v298_v50, %v298_v50  ;;  %v1048_v53 = vmul.f32 %v299_v51, %v299_v51 }
  0xac   : > { %933 = vmatpush2.bf16.msra.mxu0 %v1484_v56  ;;  %v1051_v54 = vadd.f32 %v1048_v53, %v1047_v52  ;;  %v301_v56 = vld [vmem:[%s1911_s22 + $0x18] sm:$0xff]  ;;  %s1104_s22 = scalar_lea.sflag [#allocation4], %s1907_s12 }
  0xad   : > { %934 = vmatprep.subr.bf16.mxu0 %v1488_v57  ;;  %976 = vmatpush2.bf16.msra.mxu1 %v1487_v58  ;;  %v1049_v57 = vmul.f32 %v300_v55, %v300_v55  ;;  %v1050_v58 = vmul.f32 %v301_v56, %v301_v56 }
  0xae   : > { %977 = vmatprep.subr.bf16.mxu1 %v1491_v59  ;;  %1052 = vadd.xlane.f32.xlu0 %v1051_v54 }
  0xaf   : > { %v1054_v59 = vadd.f32 %v1050_v58, %v1049_v57 }
  0xb0   : > { %935 = vmatpush2.bf16.msra.mxu0 %v1490_v60  ;;  %v418_v60 = vlaneseq }
  0xb1   : > { %936 = vmatprep.subr.bf16.mxu0 %v1494_v61  ;;  %978 = vmatpush2.bf16.msra.mxu1 %v1493_v62 }
  0xb2   : > { %979 = vmatprep.subr.bf16.mxu1 %v1497_v63  ;;  %1055 = vadd.xlane.f32.xlu0 %v1054_v59  ;;  %v419_v61 = vshrl.u32 %v418_v60, 7 }
  0xb4   : > { %937 = vmatpush2.bf16.msra.mxu0 %v1496_v0  ;;  %v420_v63 = vsub.s32 0, %v419_v61  ;;  %v302_v0 = vld [vmem:[%s1993_s3] sm:$0x3]  ;;  %v1080_v48 = vadd.s32 8, %v419_v61 }
  0xb5   : > { %938 = vmatprep.subr.bf16.mxu0 %v1500_v2  ;;  %980 = vmatpush2.bf16.msra.mxu1 %v1499_v1  ;;  %v424_v1 = vsub.s32 1, %v419_v61 }
  0xb6   : > { %981 = vmatprep.subr.bf16.mxu1 %v1503_v4  ;;  %v421_v4 = vrot.slane %v302_v0, %v420_v63  ;;  %v1083_v53 = vadd.s32 %v1081_v47, %v1080_v48 }
  0xb7   : > { %v425_v5 = vrot.slane %v302_v0, %v424_v1 }
  0xb8   : > { %939 = vmatpush2.bf16.msra.mxu0 %v1502_v3  ;;  %vm1085_vm1 = vcmp.lt.s32.totalorder %v1083_v53, 50 }
  0xb9   : > { %994 = vmatprep.subr.bf16.mxu0 %v1508_v8  ;;  %982 = vmatpush2.bf16.msra.mxu1 %v1505_v6 }
  0xbb   : > { %941 = vmatmul.mubr.bf16.vlgmr.msra.gmra.mxu0 %v315_v11 }
  0xbc   : > { %995 = vmatpush1.bf16.msra.mxu0 %v1506_v12  ;;  %984 = vmatmul.mubr.bf16.vlgmr.msra.gmra.mxu1 %v317_v13 }
  0xbd   : > { %996 = vmatprep.subr.bf16.mxu0 %v1511_v14  ;;  %1026 = vmatprep.mubr.bf16.mxu0 %v320_v19 }
  0xc0   : > { %997 = vmatpush1.bf16.msra.mxu0 %v1509_v16 }
  0xc1   : > { %998 = vmatprep.subr.bf16.mxu0 %v1514_v18 }
  0xc4   : > { %999 = vmatpush1.bf16.msra.mxu0 %v1512_v20 }
  0xc5   : > { %1000 = vmatprep.subr.bf16.mxu0 %v1517_v21 }
  0xc8   : > { %1001 = vmatpush1.bf16.msra.mxu0 %v1515_v22 }
  0xc9   : > { %1002 = vmatprep.subr.bf16.mxu0 %v1520_v23 }
  0xcc   : > { %1003 = vmatpush1.bf16.msra.mxu0 %v1518_v24 }
  0xcd   : > { %1004 = vmatprep.subr.bf16.mxu0 %v1523_v25 }
  0xd0   : > { %1005 = vmatpush1.bf16.msra.mxu0 %v1521_v26 }
  0xd1   : > { %1006 = vmatprep.subr.bf16.mxu0 %v1526_v27 }
  0xd4   : > { %1007 = vmatpush1.bf16.msra.mxu0 %v1524_v28 }
  0xd5   : > { %1008 = vmatprep.subr.bf16.mxu0 %v1529_v29 }
  0xd8   : > { %1009 = vmatpush1.bf16.msra.mxu0 %v1527_v30 }
  0xd9   : > { %1010 = vmatprep.subr.bf16.mxu0 %v1532_v31 }
  0xdc   : > { %1011 = vmatpush2.bf16.msra.mxu0 %v1530_v32 }
  0xdd   : > { %1012 = vmatprep.subr.bf16.mxu0 %v1535_v33 }
  0xe0   : > { %1013 = vmatpush2.bf16.msra.mxu0 %v1533_v34 }
  0xe1   : > { %1014 = vmatprep.subr.bf16.mxu0 %v1538_v35 }
  0xe4   : > { %1015 = vmatpush2.bf16.msra.mxu0 %v1536_v36 }
  0xe5   : > { %1016 = vmatprep.subr.bf16.mxu0 %v1541_v37 }
  0xe8   : > { %1017 = vmatpush2.bf16.msra.mxu0 %v1539_v38 }
  0xe9   : > { %1018 = vmatprep.subr.bf16.mxu0 %v1544_v39 }
  0xec   : > { %1019 = vmatpush2.bf16.msra.mxu0 %v1542_v40 }
  0xed   : > { %1020 = vmatprep.subr.bf16.mxu0 %v1547_v41 }
  0xf0   : > { %1021 = vmatpush2.bf16.msra.mxu0 %v1545_v42 }
  0xf1   : > { %1022 = vmatprep.subr.bf16.mxu0 %v1550_v43 }
  0xf4   : > { %1023 = vmatpush2.bf16.msra.mxu0 %v1548_v44 }
  0xf5   : > { %1024 = vmatprep.subr.bf16.mxu0 %v1553_v45 }
  0xf8   : > { %1025 = vmatpush2.bf16.msra.mxu0 %v1551_v46 }
  0xfb   : > { %1027 = vmatmul.mubr.bf16.vlgmr.msra.gmra.mxu0 %v319_v49 }
 0x137   : > { %v1053_v39 = vpop.xlane.xlu0 %1052 }
 0x13b   : > { %v1056_v43 = vpop.xlane.xlu0 %1055 }
 0x17b   : > { %v942_v62 = vpop.f32.mrf.mxu0 }
 0x17c   : > { %v985_v3 = vpop.f32.mrf.mxu1  ;;  %v943_v8 = vadd.f32 %v942_v62, %v421_v4 }
 0x17d   : > { %v944_v2 = vpop.f32.mrf.mxu0 }
 0x17e   : > { %v987_v7 = vpop.f32.mrf.mxu1  ;;  %v945_v9 = vadd.f32 %v944_v2, %v425_v5  ;;  %v986_v12 = vadd.f32 %v985_v3, %v943_v8 }
 0x17f   : > { %v946_v6 = vpop.f32.mrf.mxu0 }
 0x180   : > { %v989_v11 = vpop.f32.mrf.mxu1  ;;  %v947_v13 = vadd.f32 %v946_v6, %v421_v4  ;;  %v988_v16 = vadd.f32 %v987_v7, %v945_v9 }
 0x181   : > { %v948_v10 = vpop.f32.mrf.mxu0 }
 0x182   : > { %v949_v14 = vadd.f32 %v948_v10, %v425_v5  ;;  %v991_v17 = vpop.f32.mrf.mxu1  ;;  %v990_v20 = vadd.f32 %v989_v11, %v947_v13 }
 0x184   : > { %v992_v22 = vadd.f32 %v991_v17, %v949_v14 }
 0x1bb   : > { %v1028_v15 = vpop.f32.mrf.mxu0 }
 0x1bc   : > { %v1029_v18 = vadd.f32 %v1028_v15, %v986_v12 }
 0x1bd   : > { %v1030_v19 = vpop.f32.mrf.mxu0 }
 0x1be   : > { %v1031_v21 = vadd.f32 %v1030_v19, %v988_v16  ;;  %v1057_v26 = vmul.f32 %v1029_v18, %v1029_v18  ;;  %v1037_v28 = vmul.f32 %v1029_v18, %v298_v50  ;;  %v1082_v50 = vadd.s32 %v1081_v47, %v419_v61 }
 0x1bf   : > { %v1032_v23 = vpop.f32.mrf.mxu0 }
 0x1c0   : > { %v1038_v24 = vmul.f32 %v1031_v21, %v299_v51  ;;  %v1033_v25 = vadd.f32 %v1032_v23, %v990_v20  ;;  %v1058_v27 = vmul.f32 %v1031_v21, %v1031_v21  ;;  %vm1084_vm0 = vcmp.lt.s32.totalorder %v1082_v50, 50 }
 0x1c1   : > { %v1034_v29 = vpop.f32.mrf.mxu0 }
 0x1c2   : > { %v1035_v30 = vadd.f32 %v1034_v29, %v992_v22  ;;  %v1061_v31 = vadd.f32 %v1058_v27, %v1057_v26  ;;  %v1041_v32 = vadd.f32 %v1038_v24, %v1037_v28  ;;  %v1059_v33 = vmul.f32 %v1033_v25, %v1033_v25 }
 0x1c3   : > { %v1039_v37 = vmul.f32 %v1033_v25, %v300_v55 }
 0x1c4   : > { %v1060_v34 = vmul.f32 %v1035_v30, %v1035_v30  ;;  %1062 = vadd.xlane.f32.xlu1 %v1061_v31  ;;  %1042 = vadd.xlane.f32.xlu0 %v1041_v32  ;;  %v1040_v35 = vmul.f32 %v1035_v30, %v301_v56 }
 0x1c6   : > { %v1064_v36 = vadd.f32 %v1060_v34, %v1059_v33  ;;  %v1044_v38 = vadd.f32 %v1040_v35, %v1039_v37 }
 0x1c8   : > { %1065 = vadd.xlane.f32.xlu1 %v1064_v36 }
 0x1cc   : > { %1045 = vadd.xlane.f32.xlu1 %v1044_v38 }
 0x24d   : > { %v1063_v40 = vpop.xlane.xlu1 %1062  ;;  %v1043_v51 = vpop.xlane.xlu0 %1042 }
 0x24e   : > { %v1067_v41 = vmul.f32 %v1063_v40, %v1053_v39 }
 0x250   : > { %v1069_v42 = vmax.f32 %v1067_v41, 1e-16 }
 0x251   : > { %v1066_v44 = vpop.xlane.xlu1 %1065 }
 0x252   : > { %1554 = vrsqrt.f32 %v1069_v42  ;;  %v1068_v45 = vmul.f32 %v1066_v44, %v1056_v43 }
 0x254   : > { %v1070_v46 = vmax.f32 %v1068_v45, 1e-16 }
 0x255   : > { %v1046_v56 = vpop.xlane.xlu1 %1045 }
 0x256   : > { %1556 = vrsqrt.f32 %v1070_v46 }
 0x25f   : > { %v1555_v49 = vpop.eup %1554 }
 0x260   : > { %v1073_v52 = vmul.f32 %v1555_v49, %v1043_v51 }
 0x262   : > { %v1075_v54 = vsub.f32 1.0, %v1073_v52 }
 0x263   : > { %v1557_v55 = vpop.eup %1556 }
 0x264   : > { %v1074_v57 = vmul.f32 %v1557_v55, %v1046_v56  ;;  %v1086_v58 = vsel %vm1084_vm0, %v1075_v54, 0.0 }
 0x265   : > { %v1089_v62 = vsel %vm1088_vm2, %v1086_v58, 0.0 }
 0x266   : > { %v1076_v59 = vsub.f32 1.0, %v1074_v57 }
 0x268   : > { %v1087_v60 = vsel %vm1085_vm1, %v1076_v59, 0.0 }
 0x269   : > { %v1090_v63 = vsel %vm1088_vm2, %v1087_v60, 0.0 }
 0x26a   : > { %v1091_v0 = vadd.f32 %v1090_v63, %v1089_v62 }
 0x26c   : > { %1092 = vadd.xlane.f32.xlu0 %v1091_v0 }
 0x2f5   : > { %v1093_v61 = vpop.xlane.xlu0 %1092 }
 0x2f6   : > { %v1094_v1 = vrot.slane %v1093_v61, 4 }
 0x2f8   : > { %v1095_v2 = vadd.f32 %v1094_v1, %v1093_v61 }
 0x2fa   : > { %v1096_v3 = vrot.slane %v1095_v2, 2 }
 0x2fc   : > { %v1097_v4 = vadd.f32 %v1096_v3, %v1095_v2 }
 0x2fe   : > { %v1098_v5 = vrot.slane %v1097_v4, 1 }
 0x300   : > { %v1099_v6 = vadd.f32 %v1098_v5, %v1097_v4 }
 0x302   : > { %1350 = vpush %v1099_v6 }
 0x333   : > { %s1351_s9 = spop %1350 }
 0x334   : > { %v1101_v7 = vstv %s1351_s9 }
 0x335   : > { %1102 = vst [vmem:[%s285_s20] sm:$0xff] %v1101_v7 }
 0x336   : > { %1649 = shalt.err (!%p1646_p0)
}
 0x337   : > { %s1650_s23 = scalar_lea.hbm %s1115_s14, 128  ;;  %s1654_s10 = scalar_lea.hbm %s1994_s4, 512 }
 0x338   : > { %p1651_p4 = scmp.ne.s32.totalorder %s1115_s14, %s1650_s23  ;;  %p1655_p7 = scmp.lt.s32.totalorder %s1115_s14, %s1994_s4 }
 0x339   : > { %p1656_p13 = scmp.lt.s32.totalorder %s1654_s10, %s1650_s23 }
 0x33a   : > { %p1652_p11 = pnand %p1651_p4, %p2006_p8 }
 0x33b   : > { %p1657_p5 = por %p1656_p13, %p1655_p7 }
 0x33c   : > { %p1653_p2 = pneg %p1652_p11 }
 0x33e   : > { %p1658_p3 = pnand %p1657_p5, %p1653_p2 }
 0x340   : > { %1661 = shalt.err (!%p1658_p3)
}
 0x341   : > { %1358 = dma.vmem_to_hbm [thread:$0]  (%p2006_p8), %s1951_s25, 128, %s1115_s14, %s1104_s22  }
 0x342 PF: > { %p1370_p9 = scmp.ge.s32.totalorder %s1708_s18, 2  ;;  %s1129_s20 = sand.u32 1, %s1696_s15  }
 0x343   : > { %p2007_p10 = scmp.ne.s32.totalorder %s2001_s28, 0  ;;  %s1130_s8 = scalar_lea.sflag [#allocation4], %s1129_s20 }
 0x345   : > { %p1365_p6 = pnand %p1370_p9, %p2007_p10 }
 0x347   : > { %p1366_p12 = pneg %p1365_p6 }
 0x349   : > { %1691 = dma.done.wait (%p1366_p12), %s1130_s8, 128  }
 0x34a   : > { %1693 = vsyncadd (%p1366_p12), %s1130_s8, 4294967168  ;;  %p20_p1 = scmp.ge.s32.totalorder %s1770_s21, 6   ;;  %s2008_s15 = smov %s1700_s16 }
 0x34b   : > { %s2009_s16 = smov %s1704_s17  ;;  %s2010_s17 = smov %s1782_s24 }
 0x34c   : > { %s2011_s18 = smov %s1770_s21  ;;  %22 = sbr.rel (!%p20_p1) target bundleno = 7 (0x7), region = 98 }
 0x351   :  { %1135 = vsyncpa [#allocation3], 1 }
 0x352   :  { %1137 = vsyncpa [#allocation3 + $0x1], 1 }
 0x353   :  { %1138 = vsyncpa [#allocation6], 1 }
 0x354   :  { %1140 = vsyncpa [#allocation6 + $0x1], 1 }
 0x355   :  { %1141 = vsyncpa [#allocation4], 1 }
 0x356   :  { %1143 = vsyncpa [#allocation4 + $0x1], 1 }

</bundles_post_ra>
